<compile_context>
chip_gen: v7x
topology: tpu7x:2x2x1
jax: 0.10.0
libtpu: 0.0.40
codegen_flags: <defaults>
</compile_context>

<pallas_src>
import functools

import jax
import jax.numpy as jnp
from jax.experimental import pallas as pl
from jax.experimental.pallas import tpu as pltpu


def _round_up(a, b):
    return (a + b - 1) // b * b


def _twoloss_kernel(x_ref, y_ref, o_ref,
                    sx_ref, sy_ref, sxx_ref, syy_ref, sxy_ref, se_ref,
                    *, inv_row, inv_rows, inv_total):
    step = pl.program_id(0)

    @pl.when(step == 0)
    def _init():
        sx_ref[...] = jnp.zeros_like(sx_ref)
        sy_ref[...] = jnp.zeros_like(sy_ref)
        sxx_ref[...] = jnp.zeros_like(sxx_ref)
        syy_ref[...] = jnp.zeros_like(syy_ref)
        sxy_ref[...] = jnp.zeros_like(sxy_ref)
        se_ref[...] = jnp.zeros_like(se_ref)

    xt = x_ref[...].astype(jnp.float32)
    yt = y_ref[...].astype(jnp.float32)
    d = (xt + 1e-8) - (yt + 1e-8)  # faithful to MSELoss(pr + 1e-8, gt + 1e-8)

    # per-row raw moments (zero padding contributes nothing)
    sx_ref[...] += jnp.sum(xt, axis=-1, keepdims=True)
    sy_ref[...] += jnp.sum(yt, axis=-1, keepdims=True)
    sxx_ref[...] += jnp.sum(xt * xt, axis=-1, keepdims=True)
    syy_ref[...] += jnp.sum(yt * yt, axis=-1, keepdims=True)
    sxy_ref[...] += jnp.sum(xt * yt, axis=-1, keepdims=True)
    se_ref[...] += jnp.sum(d * d, keepdims=True)

    @pl.when(step == pl.num_programs(0) - 1)
    def _finalize():
        sx = sx_ref[...]
        sy = sy_ref[...]
        # centered sums: sum((v - mean)^2) = sum(v^2) - sum(v)^2 / n  (clamped >= 0)
        sxx = jnp.maximum(sxx_ref[...] - sx * sx * inv_row, 0.0)
        syy = jnp.maximum(syy_ref[...] - sy * sy * inv_row, 0.0)
        sxy = sxy_ref[...] - sx * sy * inv_row
        # faithful to the torch parenthesization: sqrt(sxx * sqrt(syy)) + 1e-4
        div = jnp.sqrt(sxx * jnp.sqrt(syy)) + 1e-4
        tt = 1.0 - sxy / div
        tt = jnp.where(jnp.isnan(tt), 1.0, tt)
        pearson = jnp.sum(tt, axis=0, keepdims=True) * inv_rows      # (1, 1)
        pearson = jnp.where(jnp.isnan(pearson), 1.0, pearson)
        mse_v = se_ref[...] * inv_total                              # (1, 1)
        o_ref[...] = 0.5 * pearson + 0.5 * mse_v


def twoloss(x, y):
    assert x.shape == y.shape
    assert x.ndim >= 2, "expects (batch, ...) inputs"
    B = int(x.shape[0])
    L = 1
    for s in x.shape[1:]:
        L *= int(s)

    xf = x.reshape(B, L)   # native dtype on the wire; cast happens in-kernel
    yf = y.reshape(B, L)

    # lane-dense tiling over the flattened per-sample axis
    MAX_TILE_ELEMS = 256 * 1024          # ~1 MiB of f32 per input tile (v7x-safe w/ double buffering)
    l128 = _round_up(L, 128)
    budget_lanes = max(128, (MAX_TILE_ELEMS // max(B, 1)) // 128 * 128)
    tl = min(l128, budget_lanes)
    lp = _round_up(L, tl)
    if lp != L:
        pad = lp - L
        xf = jnp.pad(xf, ((0, 0), (0, pad)))   # zeros: do not change any raw sum
        yf = jnp.pad(yf, ((0, 0), (0, pad)))

    kernel = functools.partial(
        _twoloss_kernel,
        inv_row=1.0 / float(L),
        inv_rows=1.0 / float(B),
        inv_total=1.0 / float(B * L),
    )

    out = pl.pallas_call(
        kernel,
        out_shape=jax.ShapeDtypeStruct((1, 1), jnp.float32),
        grid_spec=pltpu.PrefetchScalarGridSpec(
            num_scalar_prefetch=0,
            grid=(lp // tl,),
            in_specs=[
                pl.BlockSpec((B, tl), lambda l: (0, l)),
                pl.BlockSpec((B, tl), lambda l: (0, l)),
            ],
            out_specs=pl.BlockSpec((1, 1), lambda l: (0, 0)),
            scratch_shapes=[
                pltpu.VMEM((B, 1), jnp.float32),  # sum x   (per row)
                pltpu.VMEM((B, 1), jnp.float32),  # sum y
                pltpu.VMEM((B, 1), jnp.float32),  # sum x^2
                pltpu.VMEM((B, 1), jnp.float32),  # sum y^2
                pltpu.VMEM((B, 1), jnp.float32),  # sum x*y
                pltpu.VMEM((1, 1), jnp.float32),  # sum (x-y)^2
            ],
        ),
        compiler_params=pltpu.CompilerParams(
            dimension_semantics=("arbitrary",),   # reduction axis carries the accumulators
        ),
        # TODO(synk): on v7x the element grid could additionally be split across the
        # 2 TensorCores (per-core partial sums combined in JAX) for ~2x read bandwidth.
    )(xf, yf)
    return out[0, 0]


def _reference(x, y):
    """Direct JAX translation of the PyTorch twoloss forward."""
    b = x.shape[0]
    xf = x.reshape(b, -1).astype(jnp.float32)
    yf = y.reshape(b, -1).astype(jnp.float32)
    xb = xf - jnp.mean(xf, axis=1, keepdims=True)
    yb = yf - jnp.mean(yf, axis=1, keepdims=True)
    num = jnp.sum(xb * yb, axis=1)
    div = jnp.sqrt(jnp.sum(xb ** 2, axis=1) * jnp.sqrt(jnp.sum(yb ** 2, axis=1))) + 1e-4
    tt = 1.0 - num / div
    tt = jnp.where(jnp.isnan(tt), 1.0, tt)
    pearson = jnp.mean(tt)
    pearson = jnp.where(jnp.isnan(pearson), 1.0, pearson)
    mse_v = jnp.mean(((xf + 1e-8) - (yf + 1e-8)) ** 2)
    return 0.5 * pearson + 0.5 * mse_v


if __name__ == "__main__":
    key = jax.random.PRNGKey(0)
    kx, ky = jax.random.split(key)

    # small shapes consistent with the module: batch=2, seq=8, hidden=32
    x = jax.random.normal(kx, (2, 8, 32), dtype=jnp.float32)
    y = jax.random.normal(ky, (2, 8, 32), dtype=jnp.float32)

    result = jax.block_until_ready(twoloss(x, y))
    ref = jax.block_until_ready(_reference(x, y))
    assert jnp.allclose(result, ref, rtol=1e-4, atol=1e-5), (result, ref)

    print("KERNEL_OK")
</pallas_src>

<mosaic_0001>
module attributes {stable_mosaic.version = 11 : i64} {
  func.func @_twoloss_kernel(%arg0: i32, %arg1: memref<2x256xf32, #tpu.memory_space<vmem>>, %arg2: memref<2x256xf32, #tpu.memory_space<vmem>>, %arg3: memref<1x1xf32, #tpu.memory_space<vmem>>, %arg4: memref<2x1xf32, #tpu.memory_space<vmem>>, %arg5: memref<2x1xf32, #tpu.memory_space<vmem>>, %arg6: memref<2x1xf32, #tpu.memory_space<vmem>>, %arg7: memref<2x1xf32, #tpu.memory_space<vmem>>, %arg8: memref<2x1xf32, #tpu.memory_space<vmem>>, %arg9: memref<1x1xf32, #tpu.memory_space<vmem>>) attributes {dimension_semantics = [#tpu.dimension_semantics<arbitrary>], iteration_bounds = array<i64: 1>, scalar_prefetch = 0 : i64, scratch_operands = 6 : i64, tpu.core_type = #tpu.core_type<tc>, window_params = [{transform_indices = @transform_0, window_bounds = array<i64: 2, 256>}, {transform_indices = @transform_1, window_bounds = array<i64: 2, 256>}, {pipeline_mode = #tpu.pipeline_mode<synchronous>, transform_indices = @transform_2, window_bounds = array<i64: 1, 1>}]} {
    %c0_i32 = arith.constant 0 : i32
    %0 = arith.cmpi eq, %arg0, %c0_i32 : i32
    %1 = arith.extui %0 : i1 to i32
    %c0_i32_0 = arith.constant 0 : i32
    %2 = arith.cmpi ne, %1, %c0_i32_0 : i32
    scf.if %2 {
      %cst_37 = arith.constant 0.000000e+00 : f32
      %50 = vector.broadcast %cst_37 : f32 to vector<2x1xf32>
      %c0_38 = arith.constant 0 : index
      %c0_39 = arith.constant 0 : index
      %51 = vector.load %arg4[%c0_38, %c0_39] : memref<2x1xf32, #tpu.memory_space<vmem>>, vector<2x1xf32>
      tpu.vector_store %arg4[%c0_38, %c0_39], %50 {strides = array<i32>} : memref<2x1xf32, #tpu.memory_space<vmem>>, vector<2x1xf32>,
      %cst_40 = arith.constant 0.000000e+00 : f32
      %52 = vector.broadcast %cst_40 : f32 to vector<2x1xf32>
      %c0_41 = arith.constant 0 : index
      %c0_42 = arith.constant 0 : index
      %53 = vector.load %arg5[%c0_41, %c0_42] : memref<2x1xf32, #tpu.memory_space<vmem>>, vector<2x1xf32>
      tpu.vector_store %arg5[%c0_41, %c0_42], %52 {strides = array<i32>} : memref<2x1xf32, #tpu.memory_space<vmem>>, vector<2x1xf32>,
      %cst_43 = arith.constant 0.000000e+00 : f32
      %54 = vector.broadcast %cst_43 : f32 to vector<2x1xf32>
      %c0_44 = arith.constant 0 : index
      %c0_45 = arith.constant 0 : index
      %55 = vector.load %arg6[%c0_44, %c0_45] : memref<2x1xf32, #tpu.memory_space<vmem>>, vector<2x1xf32>
      tpu.vector_store %arg6[%c0_44, %c0_45], %54 {strides = array<i32>} : memref<2x1xf32, #tpu.memory_space<vmem>>, vector<2x1xf32>,
      %cst_46 = arith.constant 0.000000e+00 : f32
      %56 = vector.broadcast %cst_46 : f32 to vector<2x1xf32>
      %c0_47 = arith.constant 0 : index
      %c0_48 = arith.constant 0 : index
      %57 = vector.load %arg7[%c0_47, %c0_48] : memref<2x1xf32, #tpu.memory_space<vmem>>, vector<2x1xf32>
      tpu.vector_store %arg7[%c0_47, %c0_48], %56 {strides = array<i32>} : memref<2x1xf32, #tpu.memory_space<vmem>>, vector<2x1xf32>,
      %cst_49 = arith.constant 0.000000e+00 : f32
      %58 = vector.broadcast %cst_49 : f32 to vector<2x1xf32>
      %c0_50 = arith.constant 0 : index
      %c0_51 = arith.constant 0 : index
      %59 = vector.load %arg8[%c0_50, %c0_51] : memref<2x1xf32, #tpu.memory_space<vmem>>, vector<2x1xf32>
      tpu.vector_store %arg8[%c0_50, %c0_51], %58 {strides = array<i32>} : memref<2x1xf32, #tpu.memory_space<vmem>>, vector<2x1xf32>,
      %cst_52 = arith.constant 0.000000e+00 : f32
      %60 = vector.broadcast %cst_52 : f32 to vector<1x1xf32>
      %c0_53 = arith.constant 0 : index
      %c0_54 = arith.constant 0 : index
      %61 = vector.load %arg9[%c0_53, %c0_54] : memref<1x1xf32, #tpu.memory_space<vmem>>, vector<1x1xf32>
      tpu.vector_store %arg9[%c0_53, %c0_54], %60 {strides = array<i32>} : memref<1x1xf32, #tpu.memory_space<vmem>>, vector<1x1xf32>,
    } else {
    }
    %c0 = arith.constant 0 : index
    %c0_1 = arith.constant 0 : index
    %3 = vector.load %arg1[%c0, %c0_1] : memref<2x256xf32, #tpu.memory_space<vmem>>, vector<2x256xf32>
    %c0_2 = arith.constant 0 : index
    %c0_3 = arith.constant 0 : index
    %4 = vector.load %arg2[%c0_2, %c0_3] : memref<2x256xf32, #tpu.memory_space<vmem>>, vector<2x256xf32>
    %cst = arith.constant 9.99999993E-9 : f32
    %5 = vector.broadcast %cst : f32 to vector<2x256xf32>
    %6 = arith.addf %3, %5 : vector<2x256xf32>
    %cst_4 = arith.constant 9.99999993E-9 : f32
    %7 = vector.broadcast %cst_4 : f32 to vector<2x256xf32>
    %8 = arith.addf %4, %7 : vector<2x256xf32>
    %9 = arith.subf %6, %8 : vector<2x256xf32>
    %c0_5 = arith.constant 0 : index
    %c0_6 = arith.constant 0 : index
    %10 = vector.load %arg4[%c0_5, %c0_6] : memref<2x1xf32, #tpu.memory_space<vmem>>, vector<2x1xf32>
    %cst_7 = arith.constant dense<0.000000e+00> : vector<2xf32>
    %11 = vector.multi_reduction <add>, %3, %cst_7 [1] : vector<2x256xf32> to vector<2xf32>
    %12 = vector.shape_cast %11 : vector<2xf32> to vector<2x1xf32>
    %13 = arith.addf %10, %12 : vector<2x1xf32>
    %c0_8 = arith.constant 0 : index
    %c0_9 = arith.constant 0 : index
    %14 = vector.load %arg4[%c0_8, %c0_9] : memref<2x1xf32, #tpu.memory_space<vmem>>, vector<2x1xf32>
    tpu.vector_store %arg4[%c0_8, %c0_9], %13 {strides = array<i32>} : memref<2x1xf32, #tpu.memory_space<vmem>>, vector<2x1xf32>,
    %c0_10 = arith.constant 0 : index
    %c0_11 = arith.constant 0 : index
    %15 = vector.load %arg5[%c0_10, %c0_11] : memref<2x1xf32, #tpu.memory_space<vmem>>, vector<2x1xf32>
    %cst_12 = arith.constant dense<0.000000e+00> : vector<2xf32>
    %16 = vector.multi_reduction <add>, %4, %cst_12 [1] : vector<2x256xf32> to vector<2xf32>
    %17 = vector.shape_cast %16 : vector<2xf32> to vector<2x1xf32>
    %18 = arith.addf %15, %17 : vector<2x1xf32>
    %c0_13 = arith.constant 0 : index
    %c0_14 = arith.constant 0 : index
    %19 = vector.load %arg5[%c0_13, %c0_14] : memref<2x1xf32, #tpu.memory_space<vmem>>, vector<2x1xf32>
    tpu.vector_store %arg5[%c0_13, %c0_14], %18 {strides = array<i32>} : memref<2x1xf32, #tpu.memory_space<vmem>>, vector<2x1xf32>,
    %c0_15 = arith.constant 0 : index
    %c0_16 = arith.constant 0 : index
    %20 = vector.load %arg6[%c0_15, %c0_16] : memref<2x1xf32, #tpu.memory_space<vmem>>, vector<2x1xf32>
    %21 = arith.mulf %3, %3 : vector<2x256xf32>
    %cst_17 = arith.constant dense<0.000000e+00> : vector<2xf32>
    %22 = vector.multi_reduction <add>, %21, %cst_17 [1] : vector<2x256xf32> to vector<2xf32>
    %23 = vector.shape_cast %22 : vector<2xf32> to vector<2x1xf32>
    %24 = arith.addf %20, %23 : vector<2x1xf32>
    %c0_18 = arith.constant 0 : index
    %c0_19 = arith.constant 0 : index
    %25 = vector.load %arg6[%c0_18, %c0_19] : memref<2x1xf32, #tpu.memory_space<vmem>>, vector<2x1xf32>
    tpu.vector_store %arg6[%c0_18, %c0_19], %24 {strides = array<i32>} : memref<2x1xf32, #tpu.memory_space<vmem>>, vector<2x1xf32>,
    %c0_20 = arith.constant 0 : index
    %c0_21 = arith.constant 0 : index
    %26 = vector.load %arg7[%c0_20, %c0_21] : memref<2x1xf32, #tpu.memory_space<vmem>>, vector<2x1xf32>
    %27 = arith.mulf %4, %4 : vector<2x256xf32>
    %cst_22 = arith.constant dense<0.000000e+00> : vector<2xf32>
    %28 = vector.multi_reduction <add>, %27, %cst_22 [1] : vector<2x256xf32> to vector<2xf32>
    %29 = vector.shape_cast %28 : vector<2xf32> to vector<2x1xf32>
    %30 = arith.addf %26, %29 : vector<2x1xf32>
    %c0_23 = arith.constant 0 : index
    %c0_24 = arith.constant 0 : index
    %31 = vector.load %arg7[%c0_23, %c0_24] : memref<2x1xf32, #tpu.memory_space<vmem>>, vector<2x1xf32>
    tpu.vector_store %arg7[%c0_23, %c0_24], %30 {strides = array<i32>} : memref<2x1xf32, #tpu.memory_space<vmem>>, vector<2x1xf32>,
    %c0_25 = arith.constant 0 : index
    %c0_26 = arith.constant 0 : index
    %32 = vector.load %arg8[%c0_25, %c0_26] : memref<2x1xf32, #tpu.memory_space<vmem>>, vector<2x1xf32>
    %33 = arith.mulf %3, %4 : vector<2x256xf32>
    %cst_27 = arith.constant dense<0.000000e+00> : vector<2xf32>
    %34 = vector.multi_reduction <add>, %33, %cst_27 [1] : vector<2x256xf32> to vector<2xf32>
    %35 = vector.shape_cast %34 : vector<2xf32> to vector<2x1xf32>
    %36 = arith.addf %32, %35 : vector<2x1xf32>
    %c0_28 = arith.constant 0 : index
    %c0_29 = arith.constant 0 : index
    %37 = vector.load %arg8[%c0_28, %c0_29] : memref<2x1xf32, #tpu.memory_space<vmem>>, vector<2x1xf32>
    tpu.vector_store %arg8[%c0_28, %c0_29], %36 {strides = array<i32>} : memref<2x1xf32, #tpu.memory_space<vmem>>, vector<2x1xf32>,
    %c0_30 = arith.constant 0 : index
    %c0_31 = arith.constant 0 : index
    %38 = vector.load %arg9[%c0_30, %c0_31] : memref<1x1xf32, #tpu.memory_space<vmem>>, vector<1x1xf32>
    %39 = arith.mulf %9, %9 : vector<2x256xf32>
    %40 = vector.shape_cast %39 : vector<2x256xf32> to vector<1x2x256xf32>
    %cst_32 = arith.constant dense<0.000000e+00> : vector<1xf32>
    %41 = vector.multi_reduction <add>, %40, %cst_32 [1, 2] : vector<1x2x256xf32> to vector<1xf32>
    %42 = vector.shape_cast %41 : vector<1xf32> to vector<1x1x1xf32>
    %43 = vector.extract %42[0, 0, 0] : f32 from vector<1x1x1xf32>
    %44 = vector.broadcast %43 : f32 to vector<1x1xf32>
    %45 = arith.addf %38, %44 : vector<1x1xf32>
    %c0_33 = arith.constant 0 : index
    %c0_34 = arith.constant 0 : index
    %46 = vector.load %arg9[%c0_33, %c0_34] : memref<1x1xf32, #tpu.memory_space<vmem>>, vector<1x1xf32>
    tpu.vector_store %arg9[%c0_33, %c0_34], %45 {strides = array<i32>} : memref<1x1xf32, #tpu.memory_space<vmem>>, vector<1x1xf32>,
    %c0_i32_35 = arith.constant 0 : i32
    %47 = arith.cmpi eq, %arg0, %c0_i32_35 : i32
    %48 = arith.extui %47 : i1 to i32
    %c0_i32_36 = arith.constant 0 : i32
    %49 = arith.cmpi ne, %48, %c0_i32_36 : i32
    scf.if %49 {
      %c0_37 = arith.constant 0 : index
      %c0_38 = arith.constant 0 : index
      %50 = vector.load %arg4[%c0_37, %c0_38] : memref<2x1xf32, #tpu.memory_space<vmem>>, vector<2x1xf32>
      %c0_39 = arith.constant 0 : index
      %c0_40 = arith.constant 0 : index
      %51 = vector.load %arg5[%c0_39, %c0_40] : memref<2x1xf32, #tpu.memory_space<vmem>>, vector<2x1xf32>
      %c0_41 = arith.constant 0 : index
      %c0_42 = arith.constant 0 : index
      %52 = vector.load %arg6[%c0_41, %c0_42] : memref<2x1xf32, #tpu.memory_space<vmem>>, vector<2x1xf32>
      %53 = arith.mulf %50, %50 : vector<2x1xf32>
      %cst_43 = arith.constant 3.906250e-03 : f32
      %54 = vector.broadcast %cst_43 : f32 to vector<2x1xf32>
      %55 = arith.mulf %53, %54 : vector<2x1xf32>
      %56 = arith.subf %52, %55 : vector<2x1xf32>
      %cst_44 = arith.constant 0.000000e+00 : f32
      %57 = vector.broadcast %cst_44 : f32 to vector<2x1xf32>
      %58 = arith.maximumf %56, %57 : vector<2x1xf32>
      %c0_45 = arith.constant 0 : index
      %c0_46 = arith.constant 0 : index
      %59 = vector.load %arg7[%c0_45, %c0_46] : memref<2x1xf32, #tpu.memory_space<vmem>>, vector<2x1xf32>
      %60 = arith.mulf %51, %51 : vector<2x1xf32>
      %cst_47 = arith.constant 3.906250e-03 : f32
      %61 = vector.broadcast %cst_47 : f32 to vector<2x1xf32>
      %62 = arith.mulf %60, %61 : vector<2x1xf32>
      %63 = arith.subf %59, %62 : vector<2x1xf32>
      %cst_48 = arith.constant 0.000000e+00 : f32
      %64 = vector.broadcast %cst_48 : f32 to vector<2x1xf32>
      %65 = arith.maximumf %63, %64 : vector<2x1xf32>
      %c0_49 = arith.constant 0 : index
      %c0_50 = arith.constant 0 : index
      %66 = vector.load %arg8[%c0_49, %c0_50] : memref<2x1xf32, #tpu.memory_space<vmem>>, vector<2x1xf32>
      %67 = arith.mulf %50, %51 : vector<2x1xf32>
      %cst_51 = arith.constant 3.906250e-03 : f32
      %68 = vector.broadcast %cst_51 : f32 to vector<2x1xf32>
      %69 = arith.mulf %67, %68 : vector<2x1xf32>
      %70 = arith.subf %66, %69 : vector<2x1xf32>
      %71 = math.sqrt %65 : vector<2x1xf32>
      %72 = arith.mulf %58, %71 : vector<2x1xf32>
      %73 = math.sqrt %72 : vector<2x1xf32>
      %cst_52 = arith.constant 9.99999974E-5 : f32
      %74 = vector.broadcast %cst_52 : f32 to vector<2x1xf32>
      %75 = arith.addf %73, %74 : vector<2x1xf32>
      %76 = arith.divf %70, %75 : vector<2x1xf32>
      %cst_53 = arith.constant 1.000000e+00 : f32
      %77 = vector.broadcast %cst_53 : f32 to vector<2x1xf32>
      %78 = arith.subf %77, %76 : vector<2x1xf32>
      %79 = arith.cmpf one, %78, %78 : vector<2x1xf32>
      %cst_54 = arith.constant 1.000000e+00 : f32
      %80 = vector.broadcast %cst_54 : f32 to vector<2x1xf32>
      %81 = arith.select %79, %80, %78 : vector<2x1xi1>, vector<2x1xf32>
      %cst_55 = arith.constant dense<0.000000e+00> : vector<1xf32>
      %82 = vector.multi_reduction <add>, %81, %cst_55 [0] : vector<2x1xf32> to vector<1xf32>
      %83 = vector.shape_cast %82 : vector<1xf32> to vector<1x1xf32>
      %cst_56 = arith.constant 5.000000e-01 : f32
      %84 = vector.broadcast %cst_56 : f32 to vector<1x1xf32>
      %85 = arith.mulf %83, %84 : vector<1x1xf32>
      %86 = arith.cmpf one, %85, %85 : vector<1x1xf32>
      %cst_57 = arith.constant 1.000000e+00 : f32
      %87 = vector.broadcast %cst_57 : f32 to vector<1x1xf32>
      %88 = arith.select %86, %87, %85 : vector<1x1xi1>, vector<1x1xf32>
      %c0_58 = arith.constant 0 : index
      %c0_59 = arith.constant 0 : index
      %89 = vector.load %arg9[%c0_58, %c0_59] : memref<1x1xf32, #tpu.memory_space<vmem>>, vector<1x1xf32>
      %cst_60 = arith.constant 0.001953125 : f32
      %90 = vector.broadcast %cst_60 : f32 to vector<1x1xf32>
      %91 = arith.mulf %89, %90 : vector<1x1xf32>
      %cst_61 = arith.constant 5.000000e-01 : f32
      %92 = vector.broadcast %cst_61 : f32 to vector<1x1xf32>
      %93 = arith.mulf %92, %88 : vector<1x1xf32>
      %cst_62 = arith.constant 5.000000e-01 : f32
      %94 = vector.broadcast %cst_62 : f32 to vector<1x1xf32>
      %95 = arith.mulf %94, %91 : vector<1x1xf32>
      %96 = arith.addf %93, %95 : vector<1x1xf32>
      %c0_63 = arith.constant 0 : index
      %c0_64 = arith.constant 0 : index
      %97 = vector.load %arg3[%c0_63, %c0_64] : memref<1x1xf32, #tpu.memory_space<vmem>>, vector<1x1xf32>
      tpu.vector_store %arg3[%c0_63, %c0_64], %96 {strides = array<i32>} : memref<1x1xf32, #tpu.memory_space<vmem>>, vector<1x1xf32>,
    } else {
    }
    return
  }
  func.func @transform_0(%arg0: i32) -> (i32, i32) {
    %c0_i32 = arith.constant 0 : i32
    %c0_i32_0 = arith.constant 0 : i32
    return %c0_i32, %arg0 : i32, i32
  }
  func.func @transform_1(%arg0: i32) -> (i32, i32) {
    %c0_i32 = arith.constant 0 : i32
    %c0_i32_0 = arith.constant 0 : i32
    return %c0_i32, %arg0 : i32, i32
  }
  func.func @transform_2(%arg0: i32) -> (i32, i32) {
    %c0_i32 = arith.constant 0 : i32
    %c0_i32_0 = arith.constant 0 : i32
    %c0_i32_1 = arith.constant 0 : i32
    return %c0_i32, %c0_i32_0 : i32, i32
  }
}

</mosaic_0001>

<bundles_post_ra>
// kernel: tpu_custom_call.1
= control target key start
LH: loop header
LB: loop body
LE: loop exit
PB: predicated region body
PF: predicated region fallthrough
CT: control target
= control target key end

     0   :  { %7 = vsyncpa [#allocation9], 0  ;;  %s421_s0 = inlined_call_operand.hbm [shape: f32[2,256], index: 0, kind: input, shape index: {}]   ;;  %s422_s1 = inlined_call_operand.hbm [shape: f32[2,256], index: 1, kind: input, shape index: {}]   ;;  %s423_s2 = inlined_call_operand.hbm [shape: f32[1,1], index: 2, kind: output, shape index: {}]  }
   0x1   :  { %8 = vsyncpa [#allocation12], 0 }
   0x2   :  { %9 = vsyncpa [#allocation10], 0  ;;  %s339_s9 = smov [#allocation8]   ;;  %s340_s11 = smov [#allocation11]  }
   0x3   :  { %s16_s10 = sshll.u32 %s339_s9, 4  ;;  %s26_s12 = sshll.u32 %s340_s11, 4  ;;  %s17_s10 = int_to_ptr.vmem [resolvable:$true] %s16_s10  ;;  %s27_s12 = int_to_ptr.vmem [resolvable:$true] %s26_s12 }
   0x4   :  { %s267_s15 = scalar_lea.hbm %s421_s0, 64 }
   0x5   :  { %p268_p0 = scmp.ne.s32.totalorder %s421_s0, %s267_s15  ;;  %p271_p1 = scmp.lt.u32.totalorder %s267_s15, %s421_s0 }
   0x7   :  { %p273_p2 = pnand %p271_p1, %p268_p0 }
   0x9   :  { %276 = shalt.err (!%p273_p2)
}
   0xa   :  { %s277_s20 = scalar_lea.vmem %s17_s10, 64  ;;  %p282_p4 = scmp.lt.s32.totalorder %s17_s10, %s17_s10 }
   0xb   :  { %p278_p3 = scmp.ne.s32.totalorder %s17_s10, %s277_s20  ;;  %p283_p5 = scmp.lt.s32.totalorder %s277_s20, %s277_s20 }
   0xd   :  { %p284_p6 = por %p283_p5, %p282_p4 }
   0xf   :  { %p285_p7 = pnand %p284_p6, %p278_p3 }
  0x11   :  { %288 = shalt.err (!%p285_p7)
}
  0x12   :  { %19 = dma.hbm_to_vmem [thread:$0]  %s421_s0, 64, %s17_s10, [#allocation9]  }
  0x13   :  { %s289_s25 = scalar_lea.hbm %s422_s1, 64 }
  0x14   :  { %p290_p8 = scmp.ne.s32.totalorder %s422_s1, %s289_s25  ;;  %p293_p9 = scmp.lt.u32.totalorder %s289_s25, %s422_s1 }
  0x16   :  { %p295_p10 = pnand %p293_p9, %p290_p8 }
  0x18   :  { %298 = shalt.err (!%p295_p10)
}
  0x19   :  { %s299_s30 = scalar_lea.vmem %s27_s12, 64  ;;  %p304_p12 = scmp.lt.s32.totalorder %s27_s12, %s27_s12 }
  0x1a   :  { %p300_p11 = scmp.ne.s32.totalorder %s27_s12, %s299_s30  ;;  %p305_p13 = scmp.lt.s32.totalorder %s299_s30, %s299_s30 }
  0x1c   :  { %p306_p0 = por %p305_p13, %p304_p12 }
  0x1e   :  { %p307_p1 = pnand %p306_p0, %p300_p11 }
  0x20   :  { %310 = shalt.err (!%p307_p1)
}
  0x21   :  { %29 = dma.hbm_to_vmem [thread:$0]  %s422_s1, 64, %s27_s12, [#allocation12]  }
  0x22   :  { %333 = dma.done.wait [#allocation9], 64  }
  0x23   :  { %334 = vsyncadd [#allocation9], 4294967232 }
  0x24   :  { %335 = dma.done.wait [#allocation12], 64  }
  0x25   :  { %336 = vsyncadd [#allocation12], 4294967232  ;;  %v58_v0 = vlaneseq  ;;  %vm40_vm0 = vcmask 1024   ;;  %v341_v1 = vmov 1983009808   ;;  %v342_v4 = vmov 0.0  }
  0x26   :  { %v56_v2 = vunpack.c.l.s4 %v341_v1  ;;  %42 = vst.msk [vmem:[#allocation3] sm:$0x3] %vm40_vm0, %v342_v4  ;;  %41 = vst.msk [vmem:[#allocation2] sm:$0x3] %vm40_vm0, %v342_v4  ;;  %v49_v7 = vld [vmem:[#allocation11] sm:$0xf] }
  0x27   :  { %v59_v3 = vshrl.u32 %v58_v0, 7  ;;  %43 = vst.msk [vmem:[#allocation4] sm:$0x3] %vm40_vm0, %v342_v4  ;;  %44 = vst.msk [vmem:[#allocation5] sm:$0x3] %vm40_vm0, %v342_v4  ;;  %vm65_vm1 = vcmask 1041408   ;;  %v114_v10 = vmul.f32 %v49_v7, %v49_v7 }
  0x28   :  { %45 = vst.msk [vmem:[#allocation6] sm:$0x3] %vm40_vm0, %v342_v4  ;;  %v57_v5 = vunpack.c.0.s8 %v56_v2  ;;  %v48_v8 = vld [vmem:[#allocation8] sm:$0xf]  ;;  %v51_v12 = vadd.f32 1e-08, %v49_v7 }
  0x29   :  { %v50_v11 = vadd.f32 1e-08, %v48_v8  ;;  %v134_v14 = vmul.f32 %v49_v7, %v48_v8  ;;  %v94_v15 = vmul.f32 %v48_v8, %v48_v8  ;;  %vm46_vm2 = vcmask 0   ;;  %s343_s4 = smov [#allocation13]  }
  0x2a   :  { %v60_v6 = vsub.s32 %v57_v5, %v59_v3  ;;  %47 = vst.msk [vmem:[#allocation7] sm:$0x1] %vm46_vm2, %v342_v4  ;;  %s244_s5 = sshll.u32 %s343_s4, 4  ;;  %s245_s5 = int_to_ptr.vmem [resolvable:$true] %s244_s5 }
  0x2b   :  { %v52_v19 = vsub.f32 %v50_v11, %v51_v12  ;;  %s311_s6 = scalar_lea.vmem %s245_s5, 16  ;;  %s315_s7 = scalar_lea.vmem %s245_s5, 32 }
  0x2c   :  { %v82_v9 = vrot.slane %v49_v7, %v60_v6  ;;  %v61_v13 = vrot.slane %v48_v8, %v60_v6  ;;  %v122_v18 = vrot.slane %v114_v10, %v60_v6  ;;  %v102_v20 = vrot.slane %v94_v15, %v60_v6  ;;  %p312_p2 = scmp.ne.s32.totalorder %s245_s5, %s311_s6  ;;  %p316_p3 = scmp.lt.s32.totalorder %s245_s5, %s245_s5 }
  0x2d   :  { %v154_v24 = vmul.f32 %v52_v19, %v52_v19  ;;  %v142_v29 = vrot.slane %v134_v14, %v60_v6  ;;  %v74_v46 = vld [vmem:[#allocation3] sm:$0x3]  ;;  %v53_v55 = vld [vmem:[#allocation2] sm:$0x3]  ;;  %p317_p4 = scmp.lt.s32.totalorder %s315_s7, %s311_s6 }
  0x2e   :  { %v83_v16 = vcombine.high %v82_v9, %v82_v9  ;;  %v86_v17 = vsel %vm65_vm1, %v82_v9, 0.0  ;;  %v123_v22 = vcombine.high %v122_v18, %v122_v18  ;;  %v126_v23 = vsel %vm65_vm1, %v122_v18, 0.0  ;;  %v113_v49 = vld [vmem:[#allocation5] sm:$0x3]  ;;  %v93_v53 = vld [vmem:[#allocation4] sm:$0x3] }
  0x2f   :  { %v62_v26 = vcombine.high %v61_v13, %v61_v13  ;;  %v162_v28 = vrot.slane %v154_v24, %v60_v6  ;;  %v103_v30 = vcombine.high %v102_v20, %v102_v20  ;;  %v106_v34 = vsel %vm65_vm1, %v102_v20, 0.0  ;;  %v133_v0 = vld [vmem:[#allocation6] sm:$0x3]  ;;  %p318_p5 = por %p317_p4, %p316_p3 }
  0x30   :  { %v87_v21 = vsel %vm65_vm1, %v83_v16, 0.0  ;;  %v127_v27 = vsel %vm65_vm1, %v123_v22, 0.0  ;;  %v66_v37 = vsel %vm65_vm1, %v61_v13, 0.0  ;;  %v143_v39 = vcombine.high %v142_v29, %v142_v29 }
  0x31   :  { %v88_v25 = vadd.f32 %v87_v21, %v86_v17  ;;  %v128_v31 = vadd.f32 %v127_v27, %v126_v23  ;;  %v163_v32 = vcombine.high %v162_v28, %v162_v28  ;;  %v166_v33 = vsel %vm65_vm1, %v162_v28, 0.0  ;;  %p319_p6 = pnand %p318_p5, %p312_p2 }
  0x32   :  { %v107_v35 = vsel %vm65_vm1, %v103_v30, 0.0  ;;  %v67_v38 = vsel %vm65_vm1, %v62_v26, 0.0  ;;  %v146_v43 = vsel %vm65_vm1, %v142_v29, 0.0  ;;  %v147_v44 = vsel %vm65_vm1, %v143_v39, 0.0 }
  0x33   :  { %89 = vadd.xlane.f32.xlu0 %v88_v25  ;;  %v167_v36 = vsel %vm65_vm1, %v163_v32, 0.0  ;;  %v108_v41 = vadd.f32 %v107_v35, %v106_v34  ;;  %v68_v42 = vadd.f32 %v67_v38, %v66_v37  ;;  %v148_v45 = vadd.f32 %v147_v44, %v146_v43  ;;  %v153_v35 = vld [vmem:[#allocation7] sm:$0x1] }
  0x34   :  { %v168_v40 = vadd.f32 %v167_v36, %v166_v33 }
  0x36   :  { %169 = vadd.xlane.f32.xlu1 %v168_v40 }
  0x37   :  { %129 = vadd.xlane.f32.xlu0 %v128_v31 }
  0x3a   :  { %69 = vadd.xlane.f32.xlu1 %v68_v42 }
  0x3b   :  { %109 = vadd.xlane.f32.xlu0 %v108_v41 }
  0x3e   :  { %149 = vadd.xlane.f32.xlu1 %v148_v45 }
  0xc0   :  { %v90_v47 = vpop.xlane.xlu0 %89 }
  0xc1   :  { %v91_v48 = vadd.f32 %v90_v47, %v74_v46 }
  0xc3   :  { %92 = vst.msk [vmem:[#allocation3] sm:$0x3] %vm40_vm0, %v91_v48  ;;  %v170_v52 = vpop.xlane.xlu1 %169 }
  0xc4   :  { %v130_v50 = vpop.xlane.xlu0 %129  ;;  %v171_v54 = vrot.slane %v170_v52, 4 }
  0xc5   :  { %v131_v51 = vadd.f32 %v130_v50, %v113_v49 }
  0xc6   :  { %v172_v57 = vadd.f32 %v171_v54, %v170_v52 }
  0xc7   :  { %132 = vst.msk [vmem:[#allocation5] sm:$0x3] %vm40_vm0, %v131_v51  ;;  %v70_v59 = vpop.xlane.xlu1 %69 }
  0xc8   :  { %v110_v56 = vpop.xlane.xlu0 %109  ;;  %v173_v61 = vrot.slane %v172_v57, 2  ;;  %v71_v62 = vadd.f32 %v70_v59, %v53_v55 }
  0xc9   :  { %v111_v58 = vadd.f32 %v110_v56, %v93_v53 }
  0xca   :  { %v186_v60 = vld [vmem:[#allocation3] sm:$0x3]  ;;  %73 = vst.msk [vmem:[#allocation2] sm:$0x3] %vm40_vm0, %v71_v62  ;;  %v174_v1 = vadd.f32 %v173_v61, %v172_v57 }
  0xcb   :  { %112 = vst.msk [vmem:[#allocation4] sm:$0x3] %vm40_vm0, %v111_v58  ;;  %v193_v63 = vmul.f32 %v186_v60, %v186_v60  ;;  %v150_v3 = vpop.xlane.xlu1 %149 }
  0xcc   :  { %v151_v5 = vadd.f32 %v150_v3, %v133_v0  ;;  %v175_v6 = vrot.slane %v174_v1, 1 }
  0xcd   :  { %v194_v2 = vmul.f32 0.00390625, %v193_v63 }
  0xce   :  { %v192_v4 = vld [vmem:[#allocation5] sm:$0x3]  ;;  %152 = vst.msk [vmem:[#allocation6] sm:$0x3] %vm40_vm0, %v151_v5  ;;  %v176_v8 = vadd.f32 %v175_v6, %v174_v1 }
  0xcf   :  { %v195_v7 = vsub.f32 %v192_v4, %v194_v2 }
  0xd0   :  { %254 = vpush %v176_v8 }
  0xd1   :  { %v196_v9 = vmax.f32 %v195_v7, 0.0  ;;  %v185_v10 = vld [vmem:[#allocation2] sm:$0x3] }
  0xd2   :  { %v188_v11 = vmul.f32 %v185_v10, %v185_v10  ;;  %v187_v12 = vld [vmem:[#allocation4] sm:$0x3]  ;;  %v198_v28 = vmul.f32 %v186_v60, %v185_v10 }
  0xd3   :  { %261 = vrsqrt.f32 %v196_v9  ;;  %vm203_vm3 = vcmp.eq.f32.partialorder %v196_v9, inf  ;;  %v206_v18 = vand.u32 2147483648, %v196_v9  ;;  %vm205_vm4 = vcmp.eq.f32.partialorder %v196_v9, 0.0 }
  0xd4   :  { %v189_v13 = vmul.f32 0.00390625, %v188_v11  ;;  %v199_v29 = vmul.f32 0.00390625, %v198_v28 }
  0xd5   :  { %v197_v30 = vld [vmem:[#allocation6] sm:$0x3] }
  0xd6   :  { %v190_v14 = vsub.f32 %v187_v12, %v189_v13  ;;  %v200_v31 = vsub.f32 %v197_v30, %v199_v29 }
  0xd8   :  { %v191_v16 = vmax.f32 %v190_v14, 0.0 }
  0xdd   :  { %v262_v15 = vpop.eup %261 }
  0xde   :  { %v202_v17 = vmul.f32 %v262_v15, %v196_v9 }
  0xe0   :  { %v204_v19 = vsel %vm203_vm3, %v196_v9, %v202_v17 }
  0xe1   :  { %v207_v20 = vsel %vm205_vm4, %v206_v18, %v204_v19 }
  0xe2   :  { %v208_v21 = vmul.f32 %v207_v20, %v191_v16 }
  0xe4   :  { %263 = vrsqrt.f32 %v208_v21  ;;  %vm211_vm5 = vcmp.eq.f32.partialorder %v208_v21, inf  ;;  %v214_v24 = vand.u32 2147483648, %v208_v21  ;;  %vm213_vm6 = vcmp.eq.f32.partialorder %v208_v21, 0.0 }
  0xee   :  { %v264_v22 = vpop.eup %263 }
  0xef   :  { %v210_v23 = vmul.f32 %v264_v22, %v208_v21 }
  0xf1   :  { %v212_v25 = vsel %vm211_vm5, %v208_v21, %v210_v23 }
  0xf2   :  { %v215_v26 = vsel %vm213_vm6, %v214_v24, %v212_v25 }
  0xf3   :  { %v216_v27 = vadd.f32 0.0001, %v215_v26 }
  0xf5   :  { %265 = vrcp.f32 %v216_v27 }
  0xff   :  { %v266_v32 = vpop.eup %265 }
 0x100   :  { %v218_v33 = vmul.f32 %v266_v32, %v200_v31 }
 0x101   :  { %s255_s1 = spop %254 }
 0x102   :  { %v219_v34 = vsub.f32 1.0, %v218_v33  ;;  %v178_v36 = vstv %s255_s1 }
 0x103   :  { %v179_v38 = vadd.f32 %v178_v36, %v153_v35 }
 0x104   :  { %vm220_vm7 = vcmp.ne.f32.partialorder %v219_v34, %v219_v34 }
 0x105   :  { %v221_v37 = vsel %vm220_vm7, 1.0, %v219_v34  ;;  %181 = vst.msk [vmem:[#allocation7] sm:$0x1] %vm46_vm2, %v179_v38 }
 0x106   :  { %v222_v39 = vsel %vm40_vm0, %v221_v37, 0.0 }
 0x107   :  { %v223_v40 = vrot.slane %v222_v39, 4 }
 0x109   :  { %v224_v41 = vadd.f32 %v223_v40, %v222_v39 }
 0x10b   :  { %v225_v42 = vrot.slane %v224_v41, 2 }
 0x10c   :  { %v232_v45 = vld [vmem:[#allocation7] sm:$0x1] }
 0x10d   :  { %v226_v43 = vadd.f32 %v225_v42, %v224_v41  ;;  %v233_v48 = vmul.f32 0.001953125, %v232_v45 }
 0x10f   :  { %v227_v44 = vrot.slane %v226_v43, 1  ;;  %v235_v51 = vmul.f32 0.5, %v233_v48 }
 0x111   :  { %v228_v46 = vadd.f32 %v227_v44, %v226_v43 }
 0x113   :  { %v229_v47 = vmul.f32 0.5, %v228_v46 }
 0x115   :  { %vm230_vm8 = vcmp.ne.f32.partialorder %v229_v47, %v229_v47 }
 0x116   :  { %v231_v49 = vsel %vm230_vm8, 1.0, %v229_v47 }
 0x117   :  { %v234_v50 = vmul.f32 0.5, %v231_v49 }
 0x119   :  { %v236_v52 = vadd.f32 %v235_v51, %v234_v50 }
 0x11b   :  { %237 = vst.msk [vmem:[#allocation13] sm:$0x1] %vm46_vm2, %v236_v52 }
 0x11c   :  { %322 = shalt.err (!%p319_p6)
}
 0x11d   :  { %s323_s10 = scalar_lea.hbm %s423_s2, 16 }
 0x11e   :  { %p324_p7 = scmp.ne.s32.totalorder %s423_s2, %s323_s10  ;;  %p327_p8 = scmp.lt.u32.totalorder %s323_s10, %s423_s2 }
 0x120   :  { %p329_p9 = pnand %p327_p8, %p324_p7 }
 0x122   :  { %332 = shalt.err (!%p329_p9)
}
 0x123   :  { %247 = dma.vmem_to_hbm [thread:$0]  %s245_s5, 16, %s423_s2, [#allocation10]  }
 0x124   :  { %337 = dma.done.wait [#allocation10], 16  }
 0x125   :  { %338 = vsyncadd [#allocation10], 4294967280 }
 0x126   :  { %251 = vsyncpa [#allocation9], 1 }
 0x127   :  { %252 = vsyncpa [#allocation12], 1 }
 0x128   :  { %253 = vsyncpa [#allocation10], 1 }

</bundles_post_ra>
